<compile_context>
chip_gen: v6e
topology: v6e:2x2x1
jax: 0.10.0
libtpu: 0.0.40
codegen_flags: <defaults>
</compile_context>

<pallas_src>
import jax
import jax.numpy as jnp
from jax.experimental import pallas as pl
from jax.experimental.pallas import tpu as pltpu

LANE = 128


def _swish_kernel(beta_ref, x_ref, o_ref):
    # beta_ref: (1,) float32 scalar in SMEM (scalar-prefetch operand).
    # x_ref/o_ref: (tile_rows, W) VMEM tiles.
    beta = beta_ref[0]
    x = x_ref[...].astype(jnp.float32)
    o_ref[...] = (x * jax.nn.sigmoid(beta * x)).astype(o_ref.dtype)


def _sublane_rows(dtype):
    # Minimum packed sublane tile: 8 rows for 4-byte, 16 for 2-byte, 32 for 1-byte.
    itemsize = jnp.dtype(dtype).itemsize
    return max(8, 32 // itemsize)


def _num_tensorcores():
    """Best-effort TensorCores-per-chip (2 on v7x, 1 on v5e/v6e)."""
    try:
        info = pltpu.get_tpu_info()
        for attr in ("num_cores", "num_tensorcores", "tensorcore_count", "core_count"):
            v = getattr(info, attr, None)
            if isinstance(v, int) and v > 0:
                return v
    except Exception:
        pass
    try:
        if "v7" in jax.devices()[0].device_kind.lower():
            return 2
    except Exception:
        pass
    return 1


def swish(x, beta):
    """x: any-shape float array (NCHW here). beta: scalar parameter."""
    orig_shape = x.shape
    dtype = x.dtype
    n = x.size
    if n == 0:
        return x

    itemsize = jnp.dtype(dtype).itemsize
    sublane = _sublane_rows(dtype)

    if n % LANE != 0:
        # Rare, non-NN-shaped sizes: padding/copying would multiply HBM traffic
        # for a purely bandwidth-bound op, so let XLA fuse one read + one write.
        xf = x.astype(jnp.float32)
        bf = jnp.asarray(beta, jnp.float32)
        return (xf * jax.nn.sigmoid(bf * xf)).astype(dtype)

    # Widest lane-dense slab: last dim = k * 128 (k <= 64) that evenly divides.
    x_flat = x.reshape(-1)                 # bitcast, no HBM copy
    m = n // LANE                          # number of 128-lane rows
    k = 1
    for cand in (64, 32, 16, 8, 4, 2, 1):
        if m % cand == 0:
            k = cand
            break
    W = LANE * k
    rows = m // k
    x2d = x_flat.reshape(rows, W)          # bitcast, no HBM copy

    # Block sizing: target ~4 MiB per buffer, rows rounded to the sublane tile.
    target_block_bytes = 4 * 1024 * 1024
    bytes_per_row = W * itemsize
    tile_rows = max(sublane,
                    (target_block_bytes // bytes_per_row) // sublane * sublane)

    num_tc = _num_tensorcores()
    if tile_rows >= rows:
        if (num_tc >= 2 and rows > 2 * sublane
                and rows * bytes_per_row > 512 * 1024):
            # 2-TC chip (v7x): split into two *balanced* steps so both
            # TensorCores stream roughly half the tensor each.
            tile_rows = ((pl.cdiv(rows, 2) + sublane - 1) // sublane) * sublane
        else:
            # Single full-extent block (small tensor or single-TC chip):
            # no extra pipeline step, no pointless partial DMA.
            tile_rows = rows
    elif num_tc >= 2:
        # Multi-step grid on a 2-TC chip: prefer an even number of steps.
        g = pl.cdiv(rows, tile_rows)
        if g > 1 and g % 2 == 1:
            tile_rows = ((pl.cdiv(rows, g + 1) + sublane - 1) // sublane) * sublane
    grid = (pl.cdiv(rows, tile_rows),)

    # VMEM budget derived from the block: 2 double-buffered arrays (in + out)
    # plus ~4 MiB compiler headroom; stays well under v7x's 64 MiB physical.
    block_bytes = tile_rows * W * itemsize
    vmem_limit = int(min(64 * 1024 * 1024,
                         max(16 * 1024 * 1024, 4 * block_bytes + 4 * 1024 * 1024)))

    # beta always as a 32-bit scalar, SMEM-resident before the grid starts.
    beta_arr = jnp.asarray(beta, dtype=jnp.float32).reshape((1,))

    cost = pl.CostEstimate(
        flops=5 * n,
        transcendentals=n,
        bytes_accessed=2 * n * itemsize,
    )

    out2d = pl.pallas_call(
        _swish_kernel,
        out_shape=jax.ShapeDtypeStruct((rows, W), dtype),
        grid_spec=pltpu.PrefetchScalarGridSpec(
            num_scalar_prefetch=1,          # beta_arr -> SMEM scalar
            grid=grid,
            in_specs=[
                pl.BlockSpec((tile_rows, W), lambda i, beta: (i, 0)),
            ],
            out_specs=pl.BlockSpec((tile_rows, W), lambda i, beta: (i, 0)),
        ),
        compiler_params=pltpu.CompilerParams(
            dimension_semantics=("parallel",),
            vmem_limit_bytes=vmem_limit,
        ),
        cost_estimate=cost,
    )(beta_arr, x2d)

    return out2d.reshape(orig_shape)       # bitcast, no HBM copy


if __name__ == "__main__":
    key = jax.random.PRNGKey(0)
    # Deterministic parameter init matching nn.Parameter(torch.tensor(1.0)).
    beta = jnp.float32(1.0)

    # Small NCHW input consistent with the module's usage.
    x = jax.random.normal(key, (2, 4, 16, 16), dtype=jnp.float32)

    y = jax.block_until_ready(swish(x, beta))

    # Reference check against plain JAX.
    y_ref = x * jax.nn.sigmoid(beta * x)
    assert y.shape == x.shape and y.dtype == x.dtype
    assert jnp.allclose(y, y_ref, atol=1e-6, rtol=1e-6)

    print("KERNEL_OK")
</pallas_src>

<mosaic_0001>
module attributes {stable_mosaic.version = 11 : i64} {
  func.func @_swish_kernel(%arg0: i32, %arg1: memref<1xf32, #tpu.memory_space<smem>>, %arg2: memref<1x2048xf32, #tpu.memory_space<vmem>>, %arg3: memref<1x2048xf32, #tpu.memory_space<vmem>>) attributes {dimension_semantics = [#tpu.dimension_semantics<parallel>], iteration_bounds = array<i64: 1>, scalar_prefetch = 1 : i64, scratch_operands = 0 : i64, tpu.core_type = #tpu.core_type<tc>, window_params = [{transform_indices = @transform_0, window_bounds = array<i64: 1, 2048>}, {transform_indices = @transform_1, window_bounds = array<i64: 1, 2048>}]} {
    %c0 = arith.constant 0 : index
    %0 = memref.load %arg1[%c0] : memref<1xf32, #tpu.memory_space<smem>>
    %c0_0 = arith.constant 0 : index
    %c0_1 = arith.constant 0 : index
    %1 = vector.load %arg2[%c0_0, %c0_1] : memref<1x2048xf32, #tpu.memory_space<vmem>>, vector<1x2048xf32>
    %2 = vector.broadcast %0 : f32 to vector<1x2048xf32>
    %3 = arith.mulf %2, %1 : vector<1x2048xf32>
    %4 = arith.negf %3 : vector<1x2048xf32>
    %5 = math.exp %4 : vector<1x2048xf32>
    %cst = arith.constant 1.000000e+00 : f32
    %6 = vector.broadcast %cst : f32 to vector<1x2048xf32>
    %7 = arith.addf %6, %5 : vector<1x2048xf32>
    %8 = arith.divf %6, %7 : vector<1x2048xf32>
    %9 = arith.mulf %1, %8 : vector<1x2048xf32>
    %c0_2 = arith.constant 0 : index
    %c0_3 = arith.constant 0 : index
    %10 = vector.load %arg3[%c0_2, %c0_3] : memref<1x2048xf32, #tpu.memory_space<vmem>>, vector<1x2048xf32>
    tpu.vector_store %arg3[%c0_2, %c0_3], %9 {strides = array<i32>} : memref<1x2048xf32, #tpu.memory_space<vmem>>, vector<1x2048xf32>,
    return
  }
  func.func @transform_0(%arg0: i32, %arg1: memref<1xf32, #tpu.memory_space<smem>>) -> (i32, i32) {
    %c0_i32 = arith.constant 0 : i32
    %c0_i32_0 = arith.constant 0 : i32
    return %arg0, %c0_i32 : i32, i32
  }
  func.func @transform_1(%arg0: i32, %arg1: memref<1xf32, #tpu.memory_space<smem>>) -> (i32, i32) {
    %c0_i32 = arith.constant 0 : i32
    %c0_i32_0 = arith.constant 0 : i32
    return %arg0, %c0_i32 : i32, i32
  }
}

</mosaic_0001>

<bundles_post_ra>
// kernel: tpu_custom_call.1
= control target key start
LH: loop header
LB: loop body
LE: loop exit
PB: predicated region body
PF: predicated region fallthrough
CT: control target
= control target key end

     0   :  { %8 = vsyncpa [#allocation5], 0  ;;  %s142_s0 = inlined_call_operand.<no memory space> [shape: f32[1], index: 0, kind: input, shape index: {}]   ;;  %s143_s1 = inlined_call_operand.hbm [shape: f32[1,2048], index: 1, kind: input, shape index: {}]   ;;  %s144_s2 = inlined_call_operand.hbm [shape: f32[1,2048], index: 2, kind: output, shape index: {}]  }
   0x1   :  { %9 = vsyncpa [#allocation6], 0  ;;  %s116_s9 = smov [#allocation4]  }
   0x2   :  { %s16_s10 = sshll.u32 %s116_s9, 4  ;;  %s17_s10 = int_to_ptr.vmem [resolvable:$true] %s16_s10 }
   0x3   :  { %s80_s11 = scalar_lea.vmem %s17_s10, 256  ;;  %p85_p1 = scmp.lt.s32.totalorder %s17_s10, %s17_s10 }
   0x4   :  { %p81_p0 = scmp.ne.s32.totalorder %s17_s10, %s80_s11  ;;  %p86_p2 = scmp.lt.s32.totalorder %s80_s11, %s80_s11 }
   0x6   :  { %p87_p3 = por %p86_p2, %p85_p1 }
   0x8   :  { %p88_p4 = pnand %p87_p3, %p81_p0 }
   0xa   :  { %91 = shalt.err (!%p88_p4)
}
   0xb   :  { %19 = dma.hbm_to_vmem [thread:$0]  %s143_s1, 256, %s17_s10, [#allocation5]  }
   0xc   :  { %112 = dma.done.wait [#allocation5], 256  }
   0xd   :  { %113 = vsyncadd [#allocation5], 4294967040  ;;  %v26_v0 = vstv %s142_s0  ;;  %v24_v1 = vld [vmem:[#allocation4] sm:$0xff]  ;;  %v25_v2 = vld [vmem:[#allocation4 + $0x8] sm:$0xff]  ;;  %s117_s1 = smov [#allocation7]  }
   0xe   :  { %v27_v3 = vmul.f32 %v26_v0, %v24_v1  ;;  %v28_v4 = vmul.f32 %v26_v0, %v25_v2  ;;  %s51_s16 = sshll.u32 %s117_s1, 4  ;;  %s52_s16 = int_to_ptr.vmem [resolvable:$true] %s51_s16 }
   0xf   :  { %s92_s0 = scalar_lea.vmem %s52_s16, 256  ;;  %p97_p6 = scmp.lt.s32.totalorder %s52_s16, %s52_s16 }
  0x10   :  { %v60_v5 = vmul.f32 -1.442695, %v27_v3  ;;  %v61_v6 = vmul.f32 -1.442695, %v28_v4  ;;  %p93_p5 = scmp.ne.s32.totalorder %s52_s16, %s92_s0  ;;  %p98_p7 = scmp.lt.s32.totalorder %s92_s0, %s92_s0 }
  0x12   :  { %64 = vpow2.f32 %v60_v5  ;;  %p99_p8 = por %p98_p7, %p97_p6 }
  0x13   :  { %66 = vpow2.f32 %v61_v6 }
  0x14   :  { %p100_p9 = pnand %p99_p8, %p93_p5 }
  0x1f   :  { %v65_v7 = vpop.eup %64 }
  0x20   :  { %v67_v8 = vpop.eup %66  ;;  %v35_v9 = vadd.f32 1.0, %v65_v7 }
  0x21   :  { %v36_v10 = vadd.f32 1.0, %v67_v8 }
  0x22   :  { %68 = vrcp.f32 %v35_v9 }
  0x23   :  { %70 = vrcp.f32 %v36_v10 }
  0x2f   :  { %v69_v11 = vpop.eup %68 }
  0x30   :  { %v71_v12 = vpop.eup %70  ;;  %v41_v13 = vmul.f32 %v69_v11, %v24_v1 }
  0x31   :  { %v42_v14 = vmul.f32 %v71_v12, %v25_v2 }
  0x32   :  { %43 = vst [vmem:[#allocation7] sm:$0xff] %v41_v13 }
  0x33   :  { %44 = vst [vmem:[#allocation7 + $0x8] sm:$0xff] %v42_v14 }
  0x34   :  { %103 = shalt.err (!%p100_p9)
}
  0x35   :  { %54 = dma.vmem_to_hbm [thread:$0]  %s52_s16, 256, %s144_s2, [#allocation6]  }
  0x36   :  { %114 = dma.done.wait [#allocation6], 256  }
  0x37   :  { %115 = vsyncadd [#allocation6], 4294967040 }
  0x38   :  { %58 = vsyncpa [#allocation5], 1 }
  0x39   :  { %59 = vsyncpa [#allocation6], 1 }

</bundles_post_ra>
